<compile_context>
chip_gen: v5e
topology: v5e:2x2
jax: 0.10.0
libtpu: 0.0.40
codegen_flags: <defaults>
</compile_context>

<pallas_src>
import functools
import math

import jax
import jax.numpy as jnp
from jax import lax
from jax.experimental import pallas as pl
from jax.experimental.pallas import tpu as pltpu

_F32_EPS = float(jnp.finfo(jnp.float32).eps)

# Rows (leading axis) per grid step.
#  x-norm:  8192 * 24 * 4B  ~= 768 KiB/block; (in+out) double-buffered ~= 3 MiB.
#  yz-norm: 2048 * 192 * 4B ~= 1.5 MiB/block; (1 in + 2 out) double-buffered ~= 9 MiB
#           -> safe under the scoped-VMEM default on v5e (16 MiB), v6e/v7x (32 MiB).
_MAX_ROW_TILE_X = 8192
_MAX_ROW_TILE_YZ = 2048


def _row_tile(n, max_tile):
    """Full extent when small; otherwise a multiple-of-8 cap (ragged tail is masked)."""
    return n if n <= max_tile else max_tile


# ---------------------------------------------------------------------------
# Kernels (natural layout blocks)
# ---------------------------------------------------------------------------
def _rms_norm_1d_kernel(x_ref, w_ref, o_ref, *, inv_d, eps):
    # x_ref: (Rt, D) -- rows on sublanes, normalized dim D on lanes.
    # w_ref: (1, D)  -- resident weight.
    x = x_ref[...].astype(jnp.float32)
    ms = jnp.sum(x * x, axis=-1, keepdims=True) * inv_d          # (Rt, 1)  XLU reduce
    inv = lax.rsqrt(ms + eps)                                    # (Rt, 1)  EUP
    w = w_ref[...].astype(jnp.float32)
    o_ref[...] = (x * inv * w).astype(o_ref.dtype)


def _rms_norm_yz_kernel(y_ref, w_ref, y_out_ref, z_out_ref, *,
                        inv_w, inv_h, eps_y, eps_z):
    # y_ref: (Gt, H, W) -- groups on the leading axis, normalized dims (H, W)
    #                      on the (sublane, lane) axes.
    # w_ref: (H, W)     -- resident z-weight.
    y = y_ref[...].astype(jnp.float32)

    # --- y-norm: rms over W (lane axis), no weight ---
    ms_y = jnp.sum(y * y, axis=-1, keepdims=True) * inv_w        # (Gt, H, 1)
    inv_y = lax.rsqrt(ms_y + eps_y)
    y_n = y * inv_y
    y_out_ref[...] = y_n.astype(y_out_ref.dtype)

    # --- z-norm: rms over (H, W) of the normalized y, weighted ---
    # Derived from ms_y (exact):  sum_w y_n^2 = W * ms_y / (ms_y + eps_y)
    #   => ms_z = (1/H) * sum_h ms_y[h] * inv_y[h]^2
    ms_z = jnp.sum(ms_y * inv_y * inv_y, axis=-2, keepdims=True) * inv_h   # (Gt, 1, 1)
    inv_z = lax.rsqrt(ms_z + eps_z)
    w4 = w_ref[...].astype(jnp.float32)
    z_out_ref[...] = (y_n * inv_z * w4).astype(z_out_ref.dtype)


# ---------------------------------------------------------------------------
# Wrappers (no HBM transposes; only free contiguous reshapes)
# ---------------------------------------------------------------------------
def rms_norm_lastdim(x, weight, eps):
    """RMS norm over the last dim with an f32 weight, natural layout."""
    orig_shape = x.shape
    d = orig_shape[-1]
    r = math.prod(orig_shape[:-1]) if len(orig_shape) > 1 else 1

    x2 = x.reshape(r, d)                                 # contiguous -> free
    w2 = weight.astype(jnp.float32).reshape(1, d)
    rt = _row_tile(r, _MAX_ROW_TILE_X)

    cost = pl.CostEstimate(
        flops=int(5 * r * d),
        transcendentals=int(r),
        bytes_accessed=int(2 * r * d * jnp.dtype(x.dtype).itemsize + d * 4),
    )

    out = pl.pallas_call(
        functools.partial(_rms_norm_1d_kernel, inv_d=1.0 / d, eps=eps),
        out_shape=jax.ShapeDtypeStruct((r, d), x.dtype),
        grid_spec=pltpu.PrefetchScalarGridSpec(
            num_scalar_prefetch=0,
            grid=(pl.cdiv(r, rt),),
            in_specs=[
                pl.BlockSpec((rt, d), lambda i: (i, 0)),
                pl.BlockSpec((1, d), lambda i: (0, 0)),          # weight stays resident
            ],
            out_specs=pl.BlockSpec((rt, d), lambda i: (i, 0)),
        ),
        compiler_params=pltpu.CompilerParams(dimension_semantics=("parallel",)),
        cost_estimate=cost,
    )(x2, w2)
    return out.reshape(orig_shape)


def rms_norm_y_then_z(y, w_z, eps_y, eps_z):
    """Fused:  y_n = rms_norm(y, (W,), None, eps_y)
               z   = rms_norm(y_n, (H, W), w_z, eps_z)
    Returns (y_n, z), both in the natural layout of y."""
    orig_shape = y.shape
    h, w = orig_shape[-2], orig_shape[-1]
    g = math.prod(orig_shape[:-2]) if len(orig_shape) > 2 else 1

    y3 = y.reshape(g, h, w)                              # contiguous -> free
    wz = w_z.astype(jnp.float32).reshape(h, w)
    gt = _row_tile(g, _MAX_ROW_TILE_YZ)

    elems = g * h * w
    cost = pl.CostEstimate(
        flops=int(7 * elems),
        transcendentals=int(g * (h + 1)),
        bytes_accessed=int(3 * elems * jnp.dtype(y.dtype).itemsize + h * w * 4),
    )

    y_out, z_out = pl.pallas_call(
        functools.partial(_rms_norm_yz_kernel,
                          inv_w=1.0 / w, inv_h=1.0 / h,
                          eps_y=eps_y, eps_z=eps_z),
        out_shape=(jax.ShapeDtypeStruct((g, h, w), y.dtype),
                   jax.ShapeDtypeStruct((g, h, w), y.dtype)),
        grid_spec=pltpu.PrefetchScalarGridSpec(
            num_scalar_prefetch=0,
            grid=(pl.cdiv(g, gt),),
            in_specs=[
                pl.BlockSpec((gt, h, w), lambda i: (i, 0, 0)),
                pl.BlockSpec((h, w), lambda i: (0, 0)),          # weight stays resident
            ],
            out_specs=[
                pl.BlockSpec((gt, h, w), lambda i: (i, 0, 0)),
                pl.BlockSpec((gt, h, w), lambda i: (i, 0, 0)),
            ],
        ),
        compiler_params=pltpu.CompilerParams(dimension_semantics=("parallel",)),
        cost_estimate=cost,
    )(y3, wz)

    return y_out.reshape(orig_shape), z_out.reshape(orig_shape)


# ---------------------------------------------------------------------------
# Model
# ---------------------------------------------------------------------------
class Model:
    def __init__(self, key):
        k3, k4 = jax.random.split(key)
        # torch.rand -> uniform [0, 1)
        self.w3 = jax.random.uniform(k3, (24,), dtype=jnp.float32)
        self.w4 = jax.random.uniform(k4, (12, 16), dtype=jnp.float32)

    def __call__(self, x, y):
        x = rms_norm_lastdim(x, self.w3, eps=_F32_EPS)
        y, z = rms_norm_y_then_z(y, self.w4, eps_y=_F32_EPS, eps_z=1e-3)
        return (x, y, z)


# ---------------------------------------------------------------------------
# Pure-JAX reference (for sanity checking)
# ---------------------------------------------------------------------------
def _ref_rms_norm(x, dims, weight, eps):
    ms = jnp.mean(jnp.square(x), axis=dims, keepdims=True)
    out = x * lax.rsqrt(ms + eps)
    if weight is not None:
        out = out * weight
    return out


if __name__ == "__main__":
    key = jax.random.PRNGKey(0)
    kp, kx, ky = jax.random.split(key, 3)

    model = Model(kp)

    # Small shapes consistent with the forward: x has trailing dim 24,
    # y has trailing dims (12, 16).
    x = jax.random.uniform(kx, (2, 8, 24), dtype=jnp.float32)
    y = jax.random.uniform(ky, (2, 3, 12, 16), dtype=jnp.float32)

    out_x, out_y, out_z = model(x, y)
    jax.block_until_ready((out_x, out_y, out_z))

    # Sanity check against pure-JAX reference.
    ref_x = _ref_rms_norm(x, (-1,), model.w3, _F32_EPS)
    ref_y = _ref_rms_norm(y, (-1,), None, _F32_EPS)
    ref_z = _ref_rms_norm(ref_y, (-2, -1), model.w4, 1e-3)
    assert jnp.allclose(out_x, ref_x, atol=1e-5, rtol=1e-5)
    assert jnp.allclose(out_y, ref_y, atol=1e-5, rtol=1e-5)
    assert jnp.allclose(out_z, ref_z, atol=1e-5, rtol=1e-5)
    assert out_x.shape == x.shape and out_y.shape == y.shape and out_z.shape == y.shape

    print("KERNEL_OK")
</pallas_src>

<mosaic_0001>
module attributes {stable_mosaic.version = 11 : i64} {
  func.func @_rms_norm_1d_kernel(%arg0: i32, %arg1: memref<16x24xf32, #tpu.memory_space<vmem>>, %arg2: memref<1x24xf32, #tpu.memory_space<vmem>>, %arg3: memref<16x24xf32, #tpu.memory_space<vmem>>) attributes {dimension_semantics = [#tpu.dimension_semantics<parallel>], iteration_bounds = array<i64: 1>, scalar_prefetch = 0 : i64, scratch_operands = 0 : i64, tpu.core_type = #tpu.core_type<tc>, window_params = [{transform_indices = @transform_0, window_bounds = array<i64: 16, 24>}, {pipeline_mode = #tpu.pipeline_mode<synchronous>, transform_indices = @transform_1, window_bounds = array<i64: 1, 24>}, {transform_indices = @transform_2, window_bounds = array<i64: 16, 24>}]} {
    %c0 = arith.constant 0 : index
    %c0_0 = arith.constant 0 : index
    %0 = vector.load %arg1[%c0, %c0_0] : memref<16x24xf32, #tpu.memory_space<vmem>>, vector<16x24xf32>
    %1 = arith.mulf %0, %0 : vector<16x24xf32>
    %cst = arith.constant dense<0.000000e+00> : vector<16xf32>
    %2 = vector.multi_reduction <add>, %1, %cst [1] : vector<16x24xf32> to vector<16xf32>
    %3 = vector.shape_cast %2 : vector<16xf32> to vector<16x1xf32>
    %cst_1 = arith.constant 0.0416666679 : f32
    %4 = vector.broadcast %cst_1 : f32 to vector<16x1xf32>
    %5 = arith.mulf %3, %4 : vector<16x1xf32>
    %cst_2 = arith.constant 1.1920929E-7 : f32
    %6 = vector.broadcast %cst_2 : f32 to vector<16x1xf32>
    %7 = arith.addf %5, %6 : vector<16x1xf32>
    %8 = math.rsqrt %7 : vector<16x1xf32>
    %c0_3 = arith.constant 0 : index
    %c0_4 = arith.constant 0 : index
    %9 = vector.load %arg2[%c0_3, %c0_4] : memref<1x24xf32, #tpu.memory_space<vmem>>, vector<1x24xf32>
    %10 = vector.broadcast %8 : vector<16x1xf32> to vector<16x24xf32>
    %11 = arith.mulf %0, %10 : vector<16x24xf32>
    %12 = vector.broadcast %9 : vector<1x24xf32> to vector<16x24xf32>
    %13 = arith.mulf %11, %12 : vector<16x24xf32>
    %c0_5 = arith.constant 0 : index
    %c0_6 = arith.constant 0 : index
    %14 = vector.load %arg3[%c0_5, %c0_6] : memref<16x24xf32, #tpu.memory_space<vmem>>, vector<16x24xf32>
    tpu.vector_store %arg3[%c0_5, %c0_6], %13 {strides = array<i32>} : memref<16x24xf32, #tpu.memory_space<vmem>>, vector<16x24xf32>,
    return
  }
  func.func @transform_0(%arg0: i32) -> (i32, i32) {
    %c0_i32 = arith.constant 0 : i32
    %c0_i32_0 = arith.constant 0 : i32
    return %arg0, %c0_i32 : i32, i32
  }
  func.func @transform_1(%arg0: i32) -> (i32, i32) {
    %c0_i32 = arith.constant 0 : i32
    %c0_i32_0 = arith.constant 0 : i32
    %c0_i32_1 = arith.constant 0 : i32
    return %c0_i32, %c0_i32_0 : i32, i32
  }
  func.func @transform_2(%arg0: i32) -> (i32, i32) {
    %c0_i32 = arith.constant 0 : i32
    %c0_i32_0 = arith.constant 0 : i32
    return %arg0, %c0_i32 : i32, i32
  }
}

</mosaic_0001>

<bundles_post_ra>
// kernel: tpu_custom_call.1
= control target key start
LH: loop header
LB: loop body
LE: loop exit
PB: predicated region body
PF: predicated region fallthrough
CT: control target
= control target key end

     0   :  { %7 = vsyncpa [#allocation3], 0  ;;  %s234_s0 = inlined_call_operand.hbm [shape: f32[16,24], index: 0, kind: input, shape index: {}]   ;;  %s235_s1 = inlined_call_operand.hbm [shape: f32[1,24], index: 1, kind: input, shape index: {}]   ;;  %s236_s2 = inlined_call_operand.hbm [shape: f32[16,24], index: 2, kind: output, shape index: {}]  }
   0x1   :  { %8 = vsyncpa [#allocation6], 0 }
   0x2   :  { %9 = vsyncpa [#allocation4], 0  ;;  %s14_s11 = sshll.u32 %s234_s0, 4  ;;  %s195_s12 = smov [#allocation2]   ;;  %s15_s11 = int_to_ptr.hbm [resolvable:$true] %s14_s11 }
   0x3   :  { %s16_s13 = sshll.u32 %s195_s12, 4  ;;  %s28_s16 = sshll.u32 %s235_s1, 4  ;;  %s17_s13 = int_to_ptr.vmem [resolvable:$true] %s16_s13  ;;  %s29_s16 = int_to_ptr.hbm [resolvable:$true] %s28_s16 }
   0x4   :  { %s196_s17 = smov 128   ;;  %s197_s18 = smov 8  }
   0x5   :  { %22 = dma.hbm_to_vmem [thread:$0]  %s15_s11, 256, %s17_s13, [#allocation3], %s196_s17, %s196_s17, %s197_s18  }
   0x6   :  { %s198_s19 = smov [#allocation5]  }
   0x7   :  { %s30_s20 = sshll.u32 %s198_s19, 4  ;;  %s31_s20 = int_to_ptr.vmem [resolvable:$true] %s30_s20 }
   0x8   :  { %33 = dma.hbm_to_vmem [thread:$0]  %s29_s16, 16, %s31_s20, [#allocation6]  }
   0x9   :  { %189 = dma.done.wait [#allocation3], 256  }
   0xa   :  { %190 = vsyncadd [#allocation3], 4294967040 }
   0xb   :  { %191 = dma.done.wait [#allocation6], 16  }
   0xc   :  { %192 = vsyncadd [#allocation6], 4294967280  ;;  %v42_v0 = vld [vmem:[#allocation2] sm:$0xff]  ;;  %vm46_vm0 = vcmask 195584   ;;  %v43_v2 = vld [vmem:[#allocation2 + $0x8] sm:$0xff]  ;;  %s199_s0 = smov [#allocation7]  }
   0xd   :  { %v44_v1 = vmul.f32 %v42_v0, %v42_v0  ;;  %v45_v4 = vmul.f32 %v43_v2, %v43_v2  ;;  %v112_v20 = vld [vmem:[#allocation5] ss:$0 sm:$0xff]  ;;  %s91_s1 = sshll.u32 %s199_s0, 4  ;;  %s93_s23 = sshll.u32 %s236_s2, 4  ;;  %s92_s1 = int_to_ptr.vmem [resolvable:$true] %s91_s1  ;;  %s94_s23 = int_to_ptr.hbm [resolvable:$true] %s93_s23 }
   0xf   :  { %v47_v3 = vsel %vm46_vm0, %v44_v1, 0.0  ;;  %v50_v5 = vsel %vm46_vm0, %v45_v4, 0.0 }
  0x10   :  { %48 = vadd.xlane.f32.xlu0 %v47_v3 }
  0x18   :  { %51 = vadd.xlane.f32.xlu0 %v50_v5 }
  0x83   :  { %v49_v6 = vpop.xlane.xlu0 %48 }
  0x84   :  { %v53_v7 = vmul.f32 0.041666668, %v49_v6 }
  0x86   :  { %v55_v8 = vadd.f32 1.1920929e-07, %v53_v7 }
  0x88   :  { %113 = vrsqrt.f32 %v55_v8  ;;  %vm63_vm2 = vweird.f32 %v55_v8 }
  0x8b   :  { %v52_v9 = vpop.xlane.xlu0 %51 }
  0x8c   :  { %v54_v10 = vmul.f32 0.041666668, %v52_v9 }
  0x8e   :  { %v114_v11 = vpop.eup %113  ;;  %v56_v12 = vadd.f32 1.1920929e-07, %v54_v10 }
  0x8f   :  { %v58_v13 = vmul.f32 %v114_v11, %v55_v8  ;;  %vm64_vm1 = vweird.f32 %v114_v11 }
  0x90   :  { %115 = vrsqrt.f32 %v56_v12  ;;  %vm65_vm3 = vmor %vm63_vm2, %vm64_vm1  ;;  %vm73_vm5 = vweird.f32 %v56_v12 }
  0x91   :  { %v59_v14 = vmul.f32 %v114_v11, %v58_v13 }
  0x93   :  { %v60_v15 = vmul.f32 0.5, %v59_v14 }
  0x95   :  { %v61_v16 = vsub.f32 1.5, %v60_v15 }
  0x96   :  { %v116_v17 = vpop.eup %115 }
  0x97   :  { %v62_v18 = vmul.f32 %v114_v11, %v61_v16  ;;  %v68_v19 = vmul.f32 %v116_v17, %v56_v12  ;;  %vm74_vm4 = vweird.f32 %v116_v17 }
  0x98   :  { %vm75_vm6 = vmor %vm73_vm5, %vm74_vm4 }
  0x99   :  { %v66_v21 = vsel %vm65_vm3, %v114_v11, %v62_v18  ;;  %v69_v22 = vmul.f32 %v116_v17, %v68_v19 }
  0x9a   :  { %v78_v23 = vmul.f32 %v66_v21, %v42_v0 }
  0x9b   :  { %v70_v24 = vmul.f32 0.5, %v69_v22 }
  0x9c   :  { %v83_v25 = vmul.f32 %v112_v20, %v78_v23 }
  0x9d   :  { %v71_v26 = vsub.f32 1.5, %v70_v24 }
  0x9e   :  { %85 = vst.msk [vmem:[#allocation7] sm:$0xff] %vm46_vm0, %v83_v25 }
  0x9f   :  { %v72_v27 = vmul.f32 %v116_v17, %v71_v26 }
  0xa1   :  { %v76_v28 = vsel %vm75_vm6, %v116_v17, %v72_v27 }
  0xa2   :  { %v79_v29 = vmul.f32 %v76_v28, %v43_v2 }
  0xa4   :  { %v84_v30 = vmul.f32 %v112_v20, %v79_v29 }
  0xa6   :  { %86 = vst.msk [vmem:[#allocation7 + $0x8] sm:$0xff] %vm46_vm0, %v84_v30 }
  0xa7   :  { %99 = dma.vmem_to_hbm [thread:$0]  %s92_s1, 256, %s94_s23, [#allocation4], %s196_s17, %s196_s17, %s197_s18  }
  0xa8   :  { %193 = dma.done.wait [#allocation4], 256  }
  0xa9   :  { %194 = vsyncadd [#allocation4], 4294967040 }
  0xaa   :  { %104 = vsyncpa [#allocation3], 1 }
  0xab   :  { %105 = vsyncpa [#allocation6], 1 }
  0xac   :  { %106 = vsyncpa [#allocation4], 1 }

</bundles_post_ra>
